<compile_context>
chip_gen: v7x
topology: tpu7x:2x2x1
jax: 0.10.0
libtpu: 0.0.40
codegen_flags: <defaults>
</compile_context>

<pallas_src>
import math

import jax
import jax.numpy as jnp
from jax import lax
from jax.experimental import pallas as pl
from jax.experimental.pallas import tpu as pltpu

# ----------------------- synthetic GPT-J config -----------------------
VOCAB = 128        # vocab_size
D = 32             # n_embd (hidden_size)
H = 4              # num_attention_heads
HD = D // H        # head_size = 8
ROT = 4            # rotary_dim (even, <= head_size)
INNER = 4 * D      # n_inner = None -> 4 * n_embd = 128
N_LAYER = 2        # n_layer
EPS = 1e-5         # layer_norm_epsilon
ROPE_THETA = 10000.0
T = 8              # sequence length (num tokens)

PROJ_W = INNER + 5 * D    # fused projection width: [fc_in | Wq | Wk | Wv | WqP | WkP]


# ----------------------------- kernel ----------------------------------
def gptj_fused_kernel(x_ref, cos_ref, sin_ref, lnf_g_ref, lnf_b_ref,
                      ln_g_ref, ln_b_ref, w_in_ref, fcin_b_ref,
                      wout_ref, fcout_w_ref, fcout_b_ref,
                      out_ref, hid_ref, attn_cat_ref):
    """One grid step == one GPT-J block; hidden state is resident in VMEM."""
    layer = pl.program_id(0)

    # Layer 0: pull the token embeddings into the resident hidden state.
    @pl.when(layer == 0)
    def _():
        hid_ref[...] = x_ref[...]

    x = hid_ref[...]                                        # (T, D) residual

    # ---- ln_1 ----
    mean = jnp.mean(x, axis=-1, keepdims=True)
    xc = x - mean
    var = jnp.mean(xc * xc, axis=-1, keepdims=True)
    h = xc * lax.rsqrt(var + EPS) * ln_g_ref[0] + ln_b_ref[0]

    # ---- single wide fused projection of the ln_1 output ----
    # columns: [fc_in (INNER) | Wq | Wk | Wv | Wq@P | Wk@P]   (P = rotate_every_two)
    proj = jnp.dot(h, w_in_ref[0], preferred_element_type=jnp.float32)  # (T, PROJ_W)
    mi = proj[:, 0:INNER] + fcin_b_ref[0]                   # MLP pre-activation
    q = proj[:, INNER + 0 * D:INNER + 1 * D]
    k = proj[:, INNER + 1 * D:INNER + 2 * D]
    v = proj[:, INNER + 2 * D:INNER + 3 * D]
    qp = proj[:, INNER + 3 * D:INNER + 4 * D]               # q @ P (folded)
    kp = proj[:, INNER + 4 * D:INNER + 5 * D]               # k @ P (folded)

    # ---- GPT-J interleaved rotary (elementwise only; no permute in-kernel) ----
    cos = cos_ref[...]
    sin = sin_ref[...]
    q = q * cos + qp * sin
    k = k * cos + kp * sin

    # ---- causal attention (prefill); H is tiny -> unrolled heads ----
    # TODO(synk): paged KV-cache writeback/gather (vLLM InputMetadata) omitted.
    scale = 1.0 / math.sqrt(HD)
    row = lax.broadcasted_iota(jnp.int32, (T, T), 0)
    col = lax.broadcasted_iota(jnp.int32, (T, T), 1)
    causal = col <= row
    for hh in range(H):
        qh = q[:, hh * HD:(hh + 1) * HD] * scale
        kh = k[:, hh * HD:(hh + 1) * HD]
        vh = v[:, hh * HD:(hh + 1) * HD]
        s = lax.dot_general(qh, kh, (((1,), (1,)), ((), ())),
                            preferred_element_type=jnp.float32)   # (T, T)
        s = jnp.where(causal, s, -1e30)
        m = jnp.max(s, axis=-1, keepdims=True)
        p = jnp.exp(s - m)
        p = p * pl.reciprocal(jnp.sum(p, axis=-1, keepdims=True), approx=True)
        attn_cat_ref[:, hh * HD:(hh + 1) * HD] = jnp.dot(
            p, vh, preferred_element_type=jnp.float32)            # (T, HD)

    # single out-projection over all heads
    attn_out = jnp.dot(attn_cat_ref[...], wout_ref[0],
                       preferred_element_type=jnp.float32)        # (T, D)

    # ---- MLP (gelu_new) on the ln_1 output (parallel branch) ----
    c = math.sqrt(2.0 / math.pi)
    act = 0.5 * mi * (1.0 + jnp.tanh(c * (mi + 0.044715 * mi * mi * mi)))
    mlp_out = jnp.dot(act, fcout_w_ref[0],
                      preferred_element_type=jnp.float32) + fcout_b_ref[0]

    new_hid = attn_out + mlp_out + x
    hid_ref[...] = new_hid

    # ---- final LayerNorm + the only HBM store, on the last layer ----
    @pl.when(layer == pl.num_programs(0) - 1)
    def _():
        mf = jnp.mean(new_hid, axis=-1, keepdims=True)
        xf = new_hid - mf
        vf = jnp.mean(xf * xf, axis=-1, keepdims=True)
        out_ref[...] = xf * lax.rsqrt(vf + EPS) * lnf_g_ref[...] + lnf_b_ref[...]


# ----------------------------- wrappers ---------------------------------
def _shared_spec(shape):
    """Whole array, same block every layer (kept resident / loaded once)."""
    nd = len(shape)

    def idx(l):
        return (0,) * nd

    return pl.BlockSpec(shape, idx)


def _layer_spec(shape):
    """Per-layer stacked weight: leading [N_LAYER] axis indexed by the grid."""
    block = (1,) + tuple(shape[1:])

    def idx(l):
        return (l, 0, 0)

    return pl.BlockSpec(block, idx)


def gptj_forward(input_ids, position_ids, params):
    # embedding lookup (glue: gather in plain JAX)
    hidden = jnp.take(params["wte"], input_ids, axis=0)           # (T, D)
    cos, sin = build_rope_tables(position_ids)

    shared = [hidden, cos, sin, params["lnf_g"], params["lnf_b"]]
    stacked = [params["ln_g"], params["ln_b"], params["w_in"],
               params["fcin_b"], params["wout"], params["fcout_w"],
               params["fcout_b"]]

    grid_spec = pltpu.PrefetchScalarGridSpec(
        num_scalar_prefetch=0,
        grid=(N_LAYER,),
        in_specs=[_shared_spec(a.shape) for a in shared]
               + [_layer_spec(a.shape) for a in stacked],
        out_specs=_shared_spec((T, D)),
        scratch_shapes=[pltpu.VMEM((T, D), jnp.float32),     # resident hidden
                        pltpu.VMEM((T, D), jnp.float32)],    # head-output concat
    )
    return pl.pallas_call(
        gptj_fused_kernel,
        out_shape=jax.ShapeDtypeStruct((T, D), jnp.float32),
        grid_spec=grid_spec,
        compiler_params=pltpu.CompilerParams(
            dimension_semantics=("arbitrary",)),
    )(*shared, *stacked)


# ------------------------ parameters / tables ----------------------------
def build_rope_tables(position_ids):
    """GPT-J (interleaved) cos/sin tables of shape (T, D)."""
    pos = position_ids.astype(jnp.float32)                        # (T,)
    inv_freq = 1.0 / (ROPE_THETA **
                      (jnp.arange(0, ROT, 2, dtype=jnp.float32) / ROT))
    freqs = pos[:, None] * inv_freq[None, :]                      # (T, ROT/2)
    cos_h = jnp.repeat(jnp.cos(freqs), 2, axis=-1)                # (T, ROT)
    sin_h = jnp.repeat(jnp.sin(freqs), 2, axis=-1)
    # pass-through head dims: cos=1, sin=0
    cos_head = jnp.concatenate(
        [cos_h, jnp.ones((pos.shape[0], HD - ROT), jnp.float32)], axis=-1)
    sin_head = jnp.concatenate(
        [sin_h, jnp.zeros((pos.shape[0], HD - ROT), jnp.float32)], axis=-1)
    return jnp.tile(cos_head, (1, H)), jnp.tile(sin_head, (1, H))  # (T, D) each


def build_rope_perm():
    """rotate_every_two(x) == x @ P (block-diagonal per head, rotary dims only)."""
    pb = jnp.zeros((HD, HD), jnp.float32)
    for i in range(ROT // 2):
        pb = pb.at[2 * i + 1, 2 * i].set(-1.0)
        pb = pb.at[2 * i, 2 * i + 1].set(1.0)
    p_full = jnp.zeros((D, D), jnp.float32)
    for hh in range(H):
        p_full = p_full.at[hh * HD:(hh + 1) * HD,
                           hh * HD:(hh + 1) * HD].set(pb)
    return p_full


def init_params(key):
    kw, *layer_keys = jax.random.split(key, 1 + N_LAYER)
    p_mat = build_rope_perm()

    ln_g, ln_b, w_in, fcin_b = [], [], [], []
    wout, fcout_w, fcout_b = [], [], []
    for lk in layer_keys:
        k = jax.random.split(lk, 6)
        wqkv = jax.random.normal(k[0], (D, 3 * D), jnp.float32) * 0.02
        wq, wk, wv = wqkv[:, 0:D], wqkv[:, D:2 * D], wqkv[:, 2 * D:3 * D]
        fcin_w = jax.random.normal(k[2], (D, INNER), jnp.float32) * 0.02
        # fused projection weight: [fc_in | Wq | Wk | Wv | Wq@P | Wk@P]
        w_in.append(jnp.concatenate(
            [fcin_w, wq, wk, wv, wq @ p_mat, wk @ p_mat], axis=-1))
        ln_g.append(jnp.ones((1, D), jnp.float32))
        ln_b.append(jnp.zeros((1, D), jnp.float32))
        fcin_b.append(jax.random.normal(k[3], (1, INNER), jnp.float32) * 0.01)
        wout.append(jax.random.normal(k[1], (D, D), jnp.float32) * 0.02)
        fcout_w.append(jax.random.normal(k[4], (INNER, D), jnp.float32) * 0.02)
        fcout_b.append(jax.random.normal(k[5], (1, D), jnp.float32) * 0.01)

    return {
        "wte": jax.random.normal(kw, (VOCAB, D), jnp.float32) * 0.02,
        "lnf_g": jnp.ones((1, D), jnp.float32),
        "lnf_b": jnp.zeros((1, D), jnp.float32),
        "ln_g": jnp.stack(ln_g),        # (N_LAYER, 1, D)
        "ln_b": jnp.stack(ln_b),        # (N_LAYER, 1, D)
        "w_in": jnp.stack(w_in),        # (N_LAYER, D, PROJ_W)
        "fcin_b": jnp.stack(fcin_b),    # (N_LAYER, 1, INNER)
        "wout": jnp.stack(wout),        # (N_LAYER, D, D)
        "fcout_w": jnp.stack(fcout_w),  # (N_LAYER, INNER, D)
        "fcout_b": jnp.stack(fcout_b),  # (N_LAYER, 1, D)
    }


# ------------------------------- main ------------------------------------
if __name__ == "__main__":
    key = jax.random.PRNGKey(0)
    kp, ki = jax.random.split(key)
    params = init_params(kp)

    input_ids = jax.random.randint(ki, (T,), 0, VOCAB, dtype=jnp.int32)
    position_ids = jnp.arange(T, dtype=jnp.int32)

    out = gptj_forward(input_ids, position_ids, params)
    out = jax.block_until_ready(out)

    assert out.shape == (T, D), out.shape
    assert bool(jnp.all(jnp.isfinite(out)))
    print("KERNEL_OK")
</pallas_src>

<mosaic_0001>
module attributes {stable_mosaic.version = 11 : i64} {
  func.func @gptj_fused_kernel(%arg0: i32, %arg1: memref<8x32xf32, #tpu.memory_space<vmem>>, %arg2: memref<8x32xf32, #tpu.memory_space<vmem>>, %arg3: memref<8x32xf32, #tpu.memory_space<vmem>>, %arg4: memref<1x32xf32, #tpu.memory_space<vmem>>, %arg5: memref<1x32xf32, #tpu.memory_space<vmem>>, %arg6: memref<1x1x32xf32, #tpu.memory_space<vmem>>, %arg7: memref<1x1x32xf32, #tpu.memory_space<vmem>>, %arg8: memref<1x32x288xf32, #tpu.memory_space<vmem>>, %arg9: memref<1x1x128xf32, #tpu.memory_space<vmem>>, %arg10: memref<1x32x32xf32, #tpu.memory_space<vmem>>, %arg11: memref<1x128x32xf32, #tpu.memory_space<vmem>>, %arg12: memref<1x1x32xf32, #tpu.memory_space<vmem>>, %arg13: memref<8x32xf32, #tpu.memory_space<vmem>>, %arg14: memref<8x32xf32, #tpu.memory_space<vmem>>, %arg15: memref<8x32xf32, #tpu.memory_space<vmem>>) attributes {dimension_semantics = [#tpu.dimension_semantics<arbitrary>], iteration_bounds = array<i64: 2>, scalar_prefetch = 0 : i64, scratch_operands = 2 : i64, tpu.core_type = #tpu.core_type<tc>, window_params = [{pipeline_mode = #tpu.pipeline_mode<synchronous>, transform_indices = @transform_0, window_bounds = array<i64: 8, 32>}, {pipeline_mode = #tpu.pipeline_mode<synchronous>, transform_indices = @transform_1, window_bounds = array<i64: 8, 32>}, {pipeline_mode = #tpu.pipeline_mode<synchronous>, transform_indices = @transform_2, window_bounds = array<i64: 8, 32>}, {pipeline_mode = #tpu.pipeline_mode<synchronous>, transform_indices = @transform_3, window_bounds = array<i64: 1, 32>}, {pipeline_mode = #tpu.pipeline_mode<synchronous>, transform_indices = @transform_4, window_bounds = array<i64: 1, 32>}, {transform_indices = @transform_5, window_bounds = array<i64: 1, 1, 32>}, {transform_indices = @transform_6, window_bounds = array<i64: 1, 1, 32>}, {transform_indices = @transform_7, window_bounds = array<i64: 1, 32, 288>}, {transform_indices = @transform_8, window_bounds = array<i64: 1, 1, 128>}, {transform_indices = @transform_9, window_bounds = array<i64: 1, 32, 32>}, {transform_indices = @transform_10, window_bounds = array<i64: 1, 128, 32>}, {transform_indices = @transform_11, window_bounds = array<i64: 1, 1, 32>}, {pipeline_mode = #tpu.pipeline_mode<synchronous>, transform_indices = @transform_12, window_bounds = array<i64: 8, 32>}]} {
    %c0_i32 = arith.constant 0 : i32
    %0 = arith.cmpi eq, %arg0, %c0_i32 : i32
    %1 = arith.extui %0 : i1 to i32
    %c0_i32_0 = arith.constant 0 : i32
    %2 = arith.cmpi ne, %1, %c0_i32_0 : i32
    scf.if %2 {
      %c0_72 = arith.constant 0 : index
      %c0_73 = arith.constant 0 : index
      %162 = vector.load %arg1[%c0_72, %c0_73] : memref<8x32xf32, #tpu.memory_space<vmem>>, vector<8x32xf32>
      %c0_74 = arith.constant 0 : index
      %c0_75 = arith.constant 0 : index
      %163 = vector.load %arg14[%c0_74, %c0_75] : memref<8x32xf32, #tpu.memory_space<vmem>>, vector<8x32xf32>
      tpu.vector_store %arg14[%c0_74, %c0_75], %162 {strides = array<i32>} : memref<8x32xf32, #tpu.memory_space<vmem>>, vector<8x32xf32>,
    } else {
    }
    %c0 = arith.constant 0 : index
    %c0_1 = arith.constant 0 : index
    %3 = vector.load %arg14[%c0, %c0_1] : memref<8x32xf32, #tpu.memory_space<vmem>>, vector<8x32xf32>
    %cst = arith.constant dense<0.000000e+00> : vector<8xf32>
    %4 = vector.multi_reduction <add>, %3, %cst [1] : vector<8x32xf32> to vector<8xf32>
    %5 = vector.shape_cast %4 : vector<8xf32> to vector<8x1xf32>
    %cst_2 = arith.constant 3.200000e+01 : f32
    %6 = vector.broadcast %cst_2 : f32 to vector<8x1xf32>
    %7 = arith.divf %5, %6 : vector<8x1xf32>
    %8 = vector.broadcast %7 : vector<8x1xf32> to vector<8x32xf32>
    %9 = arith.subf %3, %8 : vector<8x32xf32>
    %10 = arith.mulf %9, %9 : vector<8x32xf32>
    %cst_3 = arith.constant dense<0.000000e+00> : vector<8xf32>
    %11 = vector.multi_reduction <add>, %10, %cst_3 [1] : vector<8x32xf32> to vector<8xf32>
    %12 = vector.shape_cast %11 : vector<8xf32> to vector<8x1xf32>
    %cst_4 = arith.constant 3.200000e+01 : f32
    %13 = vector.broadcast %cst_4 : f32 to vector<8x1xf32>
    %14 = arith.divf %12, %13 : vector<8x1xf32>
    %cst_5 = arith.constant 9.99999974E-6 : f32
    %15 = vector.broadcast %cst_5 : f32 to vector<8x1xf32>
    %16 = arith.addf %14, %15 : vector<8x1xf32>
    %17 = math.rsqrt %16 : vector<8x1xf32>
    %18 = vector.broadcast %17 : vector<8x1xf32> to vector<8x32xf32>
    %19 = arith.mulf %9, %18 : vector<8x32xf32>
    %c0_6 = arith.constant 0 : index
    %c0_7 = arith.constant 0 : index
    %c0_8 = arith.constant 0 : index
    %20 = vector.load %arg6[%c0_6, %c0_7, %c0_8] : memref<1x1x32xf32, #tpu.memory_space<vmem>>, vector<1x1x32xf32>
    %21 = vector.shape_cast %20 : vector<1x1x32xf32> to vector<1x32xf32>
    %22 = vector.broadcast %21 : vector<1x32xf32> to vector<8x32xf32>
    %23 = arith.mulf %19, %22 : vector<8x32xf32>
    %c0_9 = arith.constant 0 : index
    %c0_10 = arith.constant 0 : index
    %c0_11 = arith.constant 0 : index
    %24 = vector.load %arg7[%c0_9, %c0_10, %c0_11] : memref<1x1x32xf32, #tpu.memory_space<vmem>>, vector<1x1x32xf32>
    %25 = vector.shape_cast %24 : vector<1x1x32xf32> to vector<1x32xf32>
    %26 = vector.broadcast %25 : vector<1x32xf32> to vector<8x32xf32>
    %27 = arith.addf %23, %26 : vector<8x32xf32>
    %c0_12 = arith.constant 0 : index
    %c0_13 = arith.constant 0 : index
    %c0_14 = arith.constant 0 : index
    %28 = vector.load %arg8[%c0_12, %c0_13, %c0_14] : memref<1x32x288xf32, #tpu.memory_space<vmem>>, vector<1x32x288xf32>
    %29 = vector.shape_cast %28 : vector<1x32x288xf32> to vector<32x288xf32>
    %cst_15 = arith.constant dense<0.000000e+00> : vector<8x288xf32>
    %30 = tpu.matmul %27, %29, %cst_15 {dimension_numbers = #tpu.dot_dimension_numbers<[1], [0], [0], [1], [0, 0, 1, 1], [], []>} : vector<8x32xf32>, vector<32x288xf32>, vector<8x288xf32> -> vector<8x288xf32>
    %31 = vector.extract_strided_slice %30 {offsets = [0, 0], sizes = [8, 128], strides = [1, 1]} : vector<8x288xf32> to vector<8x128xf32>
    %c0_16 = arith.constant 0 : index
    %c0_17 = arith.constant 0 : index
    %c0_18 = arith.constant 0 : index
    %32 = vector.load %arg9[%c0_16, %c0_17, %c0_18] : memref<1x1x128xf32, #tpu.memory_space<vmem>>, vector<1x1x128xf32>
    %33 = vector.shape_cast %32 : vector<1x1x128xf32> to vector<1x128xf32>
    %34 = vector.broadcast %33 : vector<1x128xf32> to vector<8x128xf32>
    %35 = arith.addf %31, %34 : vector<8x128xf32>
    %36 = vector.extract_strided_slice %30 {offsets = [0, 128], sizes = [8, 32], strides = [1, 1]} : vector<8x288xf32> to vector<8x32xf32>
    %37 = vector.extract_strided_slice %30 {offsets = [0, 160], sizes = [8, 32], strides = [1, 1]} : vector<8x288xf32> to vector<8x32xf32>
    %38 = vector.extract_strided_slice %30 {offsets = [0, 192], sizes = [8, 32], strides = [1, 1]} : vector<8x288xf32> to vector<8x32xf32>
    %39 = vector.extract_strided_slice %30 {offsets = [0, 224], sizes = [8, 32], strides = [1, 1]} : vector<8x288xf32> to vector<8x32xf32>
    %40 = vector.extract_strided_slice %30 {offsets = [0, 256], sizes = [8, 32], strides = [1, 1]} : vector<8x288xf32> to vector<8x32xf32>
    %c0_19 = arith.constant 0 : index
    %c0_20 = arith.constant 0 : index
    %41 = vector.load %arg2[%c0_19, %c0_20] : memref<8x32xf32, #tpu.memory_space<vmem>>, vector<8x32xf32>
    %c0_21 = arith.constant 0 : index
    %c0_22 = arith.constant 0 : index
    %42 = vector.load %arg3[%c0_21, %c0_22] : memref<8x32xf32, #tpu.memory_space<vmem>>, vector<8x32xf32>
    %43 = arith.mulf %36, %41 : vector<8x32xf32>
    %44 = arith.mulf %39, %42 : vector<8x32xf32>
    %45 = arith.addf %43, %44 : vector<8x32xf32>
    %46 = arith.mulf %37, %41 : vector<8x32xf32>
    %47 = arith.mulf %40, %42 : vector<8x32xf32>
    %48 = arith.addf %46, %47 : vector<8x32xf32>
    %49 = tpu.iota {dimensions = array<i32: 0>} : vector<8x8xi32>
    %50 = tpu.iota {dimensions = array<i32: 1>} : vector<8x8xi32>
    %51 = arith.cmpi sle, %50, %49 : vector<8x8xi32>
    %52 = vector.extract_strided_slice %45 {offsets = [0, 0], sizes = [8, 8], strides = [1, 1]} : vector<8x32xf32> to vector<8x8xf32>
    %cst_23 = arith.constant 0.353553385 : f32
    %53 = vector.broadcast %cst_23 : f32 to vector<8x8xf32>
    %54 = arith.mulf %52, %53 : vector<8x8xf32>
    %55 = vector.extract_strided_slice %48 {offsets = [0, 0], sizes = [8, 8], strides = [1, 1]} : vector<8x32xf32> to vector<8x8xf32>
    %56 = vector.extract_strided_slice %38 {offsets = [0, 0], sizes = [8, 8], strides = [1, 1]} : vector<8x32xf32> to vector<8x8xf32>
    %cst_24 = arith.constant dense<0.000000e+00> : vector<8x8xf32>
    %57 = tpu.matmul %54, %55, %cst_24 {dimension_numbers = #tpu.dot_dimension_numbers<[1], [1], [0], [0], [0, 0, 1, 0], [], []>} : vector<8x8xf32>, vector<8x8xf32>, vector<8x8xf32> -> vector<8x8xf32>
    %cst_25 = arith.constant -1.000000e+30 : f32
    %58 = vector.broadcast %cst_25 : f32 to vector<8x8xf32>
    %59 = arith.select %51, %57, %58 : vector<8x8xi1>, vector<8x8xf32>
    %cst_26 = arith.constant dense<0xFF800000> : vector<8xf32>
    %60 = vector.multi_reduction <maximumf>, %59, %cst_26 [1] : vector<8x8xf32> to vector<8xf32>
    %61 = vector.shape_cast %60 : vector<8xf32> to vector<8x1xf32>
    %62 = vector.broadcast %61 : vector<8x1xf32> to vector<8x8xf32>
    %63 = arith.subf %59, %62 : vector<8x8xf32>
    %64 = math.exp %63 : vector<8x8xf32>
    %cst_27 = arith.constant dense<0.000000e+00> : vector<8xf32>
    %65 = vector.multi_reduction <add>, %64, %cst_27 [1] : vector<8x8xf32> to vector<8xf32>
    %66 = vector.shape_cast %65 : vector<8xf32> to vector<8x1xf32>
    %67 = tpu.reciprocal %66 {approx = true} : vector<8x1xf32> -> vector<8x1xf32>
    %68 = vector.broadcast %67 : vector<8x1xf32> to vector<8x8xf32>
    %69 = arith.mulf %64, %68 : vector<8x8xf32>
    %cst_28 = arith.constant dense<0.000000e+00> : vector<8x8xf32>
    %70 = tpu.matmul %69, %56, %cst_28 {dimension_numbers = #tpu.dot_dimension_numbers<[1], [0], [0], [1], [0, 0, 1, 1], [], []>} : vector<8x8xf32>, vector<8x8xf32>, vector<8x8xf32> -> vector<8x8xf32>
    %c0_29 = arith.constant 0 : index
    %c0_30 = arith.constant 0 : index
    %71 = vector.load %arg15[%c0_29, %c0_30] : memref<8x32xf32, #tpu.memory_space<vmem>>, vector<8x8xf32>
    tpu.vector_store %arg15[%c0_29, %c0_30], %70 {strides = array<i32>} : memref<8x32xf32, #tpu.memory_space<vmem>>, vector<8x8xf32>,
    %72 = vector.extract_strided_slice %45 {offsets = [0, 8], sizes = [8, 8], strides = [1, 1]} : vector<8x32xf32> to vector<8x8xf32>
    %cst_31 = arith.constant 0.353553385 : f32
    %73 = vector.broadcast %cst_31 : f32 to vector<8x8xf32>
    %74 = arith.mulf %72, %73 : vector<8x8xf32>
    %75 = vector.extract_strided_slice %48 {offsets = [0, 8], sizes = [8, 8], strides = [1, 1]} : vector<8x32xf32> to vector<8x8xf32>
    %76 = vector.extract_strided_slice %38 {offsets = [0, 8], sizes = [8, 8], strides = [1, 1]} : vector<8x32xf32> to vector<8x8xf32>
    %cst_32 = arith.constant dense<0.000000e+00> : vector<8x8xf32>
    %77 = tpu.matmul %74, %75, %cst_32 {dimension_numbers = #tpu.dot_dimension_numbers<[1], [1], [0], [0], [0, 0, 1, 0], [], []>} : vector<8x8xf32>, vector<8x8xf32>, vector<8x8xf32> -> vector<8x8xf32>
    %cst_33 = arith.constant -1.000000e+30 : f32
    %78 = vector.broadcast %cst_33 : f32 to vector<8x8xf32>
    %79 = arith.select %51, %77, %78 : vector<8x8xi1>, vector<8x8xf32>
    %cst_34 = arith.constant dense<0xFF800000> : vector<8xf32>
    %80 = vector.multi_reduction <maximumf>, %79, %cst_34 [1] : vector<8x8xf32> to vector<8xf32>
    %81 = vector.shape_cast %80 : vector<8xf32> to vector<8x1xf32>
    %82 = vector.broadcast %81 : vector<8x1xf32> to vector<8x8xf32>
    %83 = arith.subf %79, %82 : vector<8x8xf32>
    %84 = math.exp %83 : vector<8x8xf32>
    %cst_35 = arith.constant dense<0.000000e+00> : vector<8xf32>
    %85 = vector.multi_reduction <add>, %84, %cst_35 [1] : vector<8x8xf32> to vector<8xf32>
    %86 = vector.shape_cast %85 : vector<8xf32> to vector<8x1xf32>
    %87 = tpu.reciprocal %86 {approx = true} : vector<8x1xf32> -> vector<8x1xf32>
    %88 = vector.broadcast %87 : vector<8x1xf32> to vector<8x8xf32>
    %89 = arith.mulf %84, %88 : vector<8x8xf32>
    %cst_36 = arith.constant dense<0.000000e+00> : vector<8x8xf32>
    %90 = tpu.matmul %89, %76, %cst_36 {dimension_numbers = #tpu.dot_dimension_numbers<[1], [0], [0], [1], [0, 0, 1, 1], [], []>} : vector<8x8xf32>, vector<8x8xf32>, vector<8x8xf32> -> vector<8x8xf32>
    %c0_37 = arith.constant 0 : index
    %c8 = arith.constant 8 : index
    %91 = vector.load %arg15[%c0_37, %c8] : memref<8x32xf32, #tpu.memory_space<vmem>>, vector<8x8xf32>
    tpu.vector_store %arg15[%c0_37, %c8], %90 {strides = array<i32>} : memref<8x32xf32, #tpu.memory_space<vmem>>, vector<8x8xf32>,
    %92 = vector.extract_strided_slice %45 {offsets = [0, 16], sizes = [8, 8], strides = [1, 1]} : vector<8x32xf32> to vector<8x8xf32>
    %cst_38 = arith.constant 0.353553385 : f32
    %93 = vector.broadcast %cst_38 : f32 to vector<8x8xf32>
    %94 = arith.mulf %92, %93 : vector<8x8xf32>
    %95 = vector.extract_strided_slice %48 {offsets = [0, 16], sizes = [8, 8], strides = [1, 1]} : vector<8x32xf32> to vector<8x8xf32>
    %96 = vector.extract_strided_slice %38 {offsets = [0, 16], sizes = [8, 8], strides = [1, 1]} : vector<8x32xf32> to vector<8x8xf32>
    %cst_39 = arith.constant dense<0.000000e+00> : vector<8x8xf32>
    %97 = tpu.matmul %94, %95, %cst_39 {dimension_numbers = #tpu.dot_dimension_numbers<[1], [1], [0], [0], [0, 0, 1, 0], [], []>} : vector<8x8xf32>, vector<8x8xf32>, vector<8x8xf32> -> vector<8x8xf32>
    %cst_40 = arith.constant -1.000000e+30 : f32
    %98 = vector.broadcast %cst_40 : f32 to vector<8x8xf32>
    %99 = arith.select %51, %97, %98 : vector<8x8xi1>, vector<8x8xf32>
    %cst_41 = arith.constant dense<0xFF800000> : vector<8xf32>
    %100 = vector.multi_reduction <maximumf>, %99, %cst_41 [1] : vector<8x8xf32> to vector<8xf32>
    %101 = vector.shape_cast %100 : vector<8xf32> to vector<8x1xf32>
    %102 = vector.broadcast %101 : vector<8x1xf32> to vector<8x8xf32>
    %103 = arith.subf %99, %102 : vector<8x8xf32>
    %104 = math.exp %103 : vector<8x8xf32>
    %cst_42 = arith.constant dense<0.000000e+00> : vector<8xf32>
    %105 = vector.multi_reduction <add>, %104, %cst_42 [1] : vector<8x8xf32> to vector<8xf32>
    %106 = vector.shape_cast %105 : vector<8xf32> to vector<8x1xf32>
    %107 = tpu.reciprocal %106 {approx = true} : vector<8x1xf32> -> vector<8x1xf32>
    %108 = vector.broadcast %107 : vector<8x1xf32> to vector<8x8xf32>
    %109 = arith.mulf %104, %108 : vector<8x8xf32>
    %cst_43 = arith.constant dense<0.000000e+00> : vector<8x8xf32>
    %110 = tpu.matmul %109, %96, %cst_43 {dimension_numbers = #tpu.dot_dimension_numbers<[1], [0], [0], [1], [0, 0, 1, 1], [], []>} : vector<8x8xf32>, vector<8x8xf32>, vector<8x8xf32> -> vector<8x8xf32>
    %c0_44 = arith.constant 0 : index
    %c16 = arith.constant 16 : index
    %111 = vector.load %arg15[%c0_44, %c16] : memref<8x32xf32, #tpu.memory_space<vmem>>, vector<8x8xf32>
    tpu.vector_store %arg15[%c0_44, %c16], %110 {strides = array<i32>} : memref<8x32xf32, #tpu.memory_space<vmem>>, vector<8x8xf32>,
    %112 = vector.extract_strided_slice %45 {offsets = [0, 24], sizes = [8, 8], strides = [1, 1]} : vector<8x32xf32> to vector<8x8xf32>
    %cst_45 = arith.constant 0.353553385 : f32
    %113 = vector.broadcast %cst_45 : f32 to vector<8x8xf32>
    %114 = arith.mulf %112, %113 : vector<8x8xf32>
    %115 = vector.extract_strided_slice %48 {offsets = [0, 24], sizes = [8, 8], strides = [1, 1]} : vector<8x32xf32> to vector<8x8xf32>
    %116 = vector.extract_strided_slice %38 {offsets = [0, 24], sizes = [8, 8], strides = [1, 1]} : vector<8x32xf32> to vector<8x8xf32>
    %cst_46 = arith.constant dense<0.000000e+00> : vector<8x8xf32>
    %117 = tpu.matmul %114, %115, %cst_46 {dimension_numbers = #tpu.dot_dimension_numbers<[1], [1], [0], [0], [0, 0, 1, 0], [], []>} : vector<8x8xf32>, vector<8x8xf32>, vector<8x8xf32> -> vector<8x8xf32>
    %cst_47 = arith.constant -1.000000e+30 : f32
    %118 = vector.broadcast %cst_47 : f32 to vector<8x8xf32>
    %119 = arith.select %51, %117, %118 : vector<8x8xi1>, vector<8x8xf32>
    %cst_48 = arith.constant dense<0xFF800000> : vector<8xf32>
    %120 = vector.multi_reduction <maximumf>, %119, %cst_48 [1] : vector<8x8xf32> to vector<8xf32>
    %121 = vector.shape_cast %120 : vector<8xf32> to vector<8x1xf32>
    %122 = vector.broadcast %121 : vector<8x1xf32> to vector<8x8xf32>
    %123 = arith.subf %119, %122 : vector<8x8xf32>
    %124 = math.exp %123 : vector<8x8xf32>
    %cst_49 = arith.constant dense<0.000000e+00> : vector<8xf32>
    %125 = vector.multi_reduction <add>, %124, %cst_49 [1] : vector<8x8xf32> to vector<8xf32>
    %126 = vector.shape_cast %125 : vector<8xf32> to vector<8x1xf32>
    %127 = tpu.reciprocal %126 {approx = true} : vector<8x1xf32> -> vector<8x1xf32>
    %128 = vector.broadcast %127 : vector<8x1xf32> to vector<8x8xf32>
    %129 = arith.mulf %124, %128 : vector<8x8xf32>
    %cst_50 = arith.constant dense<0.000000e+00> : vector<8x8xf32>
    %130 = tpu.matmul %129, %116, %cst_50 {dimension_numbers = #tpu.dot_dimension_numbers<[1], [0], [0], [1], [0, 0, 1, 1], [], []>} : vector<8x8xf32>, vector<8x8xf32>, vector<8x8xf32> -> vector<8x8xf32>
    %c0_51 = arith.constant 0 : index
    %c24 = arith.constant 24 : index
    %131 = vector.load %arg15[%c0_51, %c24] : memref<8x32xf32, #tpu.memory_space<vmem>>, vector<8x8xf32>
    tpu.vector_store %arg15[%c0_51, %c24], %130 {strides = array<i32>} : memref<8x32xf32, #tpu.memory_space<vmem>>, vector<8x8xf32>,
    %c0_52 = arith.constant 0 : index
    %c0_53 = arith.constant 0 : index
    %132 = vector.load %arg15[%c0_52, %c0_53] : memref<8x32xf32, #tpu.memory_space<vmem>>, vector<8x32xf32>
    %c0_54 = arith.constant 0 : index
    %c0_55 = arith.constant 0 : index
    %c0_56 = arith.constant 0 : index
    %133 = vector.load %arg10[%c0_54, %c0_55, %c0_56] : memref<1x32x32xf32, #tpu.memory_space<vmem>>, vector<1x32x32xf32>
    %134 = vector.shape_cast %133 : vector<1x32x32xf32> to vector<32x32xf32>
    %cst_57 = arith.constant dense<0.000000e+00> : vector<8x32xf32>
    %135 = tpu.matmul %132, %134, %cst_57 {dimension_numbers = #tpu.dot_dimension_numbers<[1], [0], [0], [1], [0, 0, 1, 1], [], []>} : vector<8x32xf32>, vector<32x32xf32>, vector<8x32xf32> -> vector<8x32xf32>
    %cst_58 = arith.constant 5.000000e-01 : f32
    %136 = vector.broadcast %cst_58 : f32 to vector<8x128xf32>
    %137 = arith.mulf %136, %35 : vector<8x128xf32>
    %cst_59 = arith.constant 4.471500e-02 : f32
    %138 = vector.broadcast %cst_59 : f32 to vector<8x128xf32>
    %139 = arith.mulf %138, %35 : vector<8x128xf32>
    %140 = arith.mulf %139, %35 : vector<8x128xf32>
    %141 = arith.mulf %140, %35 : vector<8x128xf32>
    %142 = arith.addf %35, %141 : vector<8x128xf32>
    %cst_60 = arith.constant 0.797884583 : f32
    %143 = vector.broadcast %cst_60 : f32 to vector<8x128xf32>
    %144 = arith.mulf %143, %142 : vector<8x128xf32>
    %145 = math.tanh %144 : vector<8x128xf32>
    %cst_61 = arith.constant 1.000000e+00 : f32
    %146 = vector.broadcast %cst_61 : f32 to vector<8x128xf32>
    %147 = arith.addf %146, %145 : vector<8x128xf32>
    %148 = arith.mulf %137, %147 : vector<8x128xf32>
    %c0_62 = arith.constant 0 : index
    %c0_63 = arith.constant 0 : index
    %c0_64 = arith.constant 0 : index
    %149 = vector.load %arg11[%c0_62, %c0_63, %c0_64] : memref<1x128x32xf32, #tpu.memory_space<vmem>>, vector<1x128x32xf32>
    %150 = vector.shape_cast %149 : vector<1x128x32xf32> to vector<128x32xf32>
    %cst_65 = arith.constant dense<0.000000e+00> : vector<8x32xf32>
    %151 = tpu.matmul %148, %150, %cst_65 {dimension_numbers = #tpu.dot_dimension_numbers<[1], [0], [0], [1], [0, 0, 1, 1], [], []>} : vector<8x128xf32>, vector<128x32xf32>, vector<8x32xf32> -> vector<8x32xf32>
    %c0_66 = arith.constant 0 : index
    %c0_67 = arith.constant 0 : index
    %c0_68 = arith.constant 0 : index
    %152 = vector.load %arg12[%c0_66, %c0_67, %c0_68] : memref<1x1x32xf32, #tpu.memory_space<vmem>>, vector<1x1x32xf32>
    %153 = vector.shape_cast %152 : vector<1x1x32xf32> to vector<1x32xf32>
    %154 = vector.broadcast %153 : vector<1x32xf32> to vector<8x32xf32>
    %155 = arith.addf %151, %154 : vector<8x32xf32>
    %156 = arith.addf %135, %155 : vector<8x32xf32>
    %157 = arith.addf %156, %3 : vector<8x32xf32>
    %c0_69 = arith.constant 0 : index
    %c0_70 = arith.constant 0 : index
    %158 = vector.load %arg14[%c0_69, %c0_70] : memref<8x32xf32, #tpu.memory_space<vmem>>, vector<8x32xf32>
    tpu.vector_store %arg14[%c0_69, %c0_70], %157 {strides = array<i32>} : memref<8x32xf32, #tpu.memory_space<vmem>>, vector<8x32xf32>,
    %c1_i32 = arith.constant 1 : i32
    %159 = arith.cmpi eq, %arg0, %c1_i32 : i32
    %160 = arith.extui %159 : i1 to i32
    %c0_i32_71 = arith.constant 0 : i32
    %161 = arith.cmpi ne, %160, %c0_i32_71 : i32
    scf.if %161 {
      %cst_72 = arith.constant dense<0.000000e+00> : vector<8xf32>
      %162 = vector.multi_reduction <add>, %157, %cst_72 [1] : vector<8x32xf32> to vector<8xf32>
      %163 = vector.shape_cast %162 : vector<8xf32> to vector<8x1xf32>
      %cst_73 = arith.constant 3.200000e+01 : f32
      %164 = vector.broadcast %cst_73 : f32 to vector<8x1xf32>
      %165 = arith.divf %163, %164 : vector<8x1xf32>
      %166 = vector.broadcast %165 : vector<8x1xf32> to vector<8x32xf32>
      %167 = arith.subf %157, %166 : vector<8x32xf32>
      %168 = arith.mulf %167, %167 : vector<8x32xf32>
      %cst_74 = arith.constant dense<0.000000e+00> : vector<8xf32>
      %169 = vector.multi_reduction <add>, %168, %cst_74 [1] : vector<8x32xf32> to vector<8xf32>
      %170 = vector.shape_cast %169 : vector<8xf32> to vector<8x1xf32>
      %cst_75 = arith.constant 3.200000e+01 : f32
      %171 = vector.broadcast %cst_75 : f32 to vector<8x1xf32>
      %172 = arith.divf %170, %171 : vector<8x1xf32>
      %cst_76 = arith.constant 9.99999974E-6 : f32
      %173 = vector.broadcast %cst_76 : f32 to vector<8x1xf32>
      %174 = arith.addf %172, %173 : vector<8x1xf32>
      %175 = math.rsqrt %174 : vector<8x1xf32>
      %176 = vector.broadcast %175 : vector<8x1xf32> to vector<8x32xf32>
      %177 = arith.mulf %167, %176 : vector<8x32xf32>
      %c0_77 = arith.constant 0 : index
      %c0_78 = arith.constant 0 : index
      %178 = vector.load %arg4[%c0_77, %c0_78] : memref<1x32xf32, #tpu.memory_space<vmem>>, vector<1x32xf32>
      %179 = vector.broadcast %178 : vector<1x32xf32> to vector<8x32xf32>
      %180 = arith.mulf %177, %179 : vector<8x32xf32>
      %c0_79 = arith.constant 0 : index
      %c0_80 = arith.constant 0 : index
      %181 = vector.load %arg5[%c0_79, %c0_80] : memref<1x32xf32, #tpu.memory_space<vmem>>, vector<1x32xf32>
      %182 = vector.broadcast %181 : vector<1x32xf32> to vector<8x32xf32>
      %183 = arith.addf %180, %182 : vector<8x32xf32>
      %c0_81 = arith.constant 0 : index
      %c0_82 = arith.constant 0 : index
      %184 = vector.load %arg13[%c0_81, %c0_82] : memref<8x32xf32, #tpu.memory_space<vmem>>, vector<8x32xf32>
      tpu.vector_store %arg13[%c0_81, %c0_82], %183 {strides = array<i32>} : memref<8x32xf32, #tpu.memory_space<vmem>>, vector<8x32xf32>,
    } else {
    }
    return
  }
  func.func @transform_0(%arg0: i32) -> (i32, i32) {
    %c0_i32 = arith.constant 0 : i32
    %c0_i32_0 = arith.constant 0 : i32
    %c0_i32_1 = arith.constant 0 : i32
    return %c0_i32, %c0_i32_0 : i32, i32
  }
  func.func @transform_1(%arg0: i32) -> (i32, i32) {
    %c0_i32 = arith.constant 0 : i32
    %c0_i32_0 = arith.constant 0 : i32
    %c0_i32_1 = arith.constant 0 : i32
    return %c0_i32, %c0_i32_0 : i32, i32
  }
  func.func @transform_2(%arg0: i32) -> (i32, i32) {
    %c0_i32 = arith.constant 0 : i32
    %c0_i32_0 = arith.constant 0 : i32
    %c0_i32_1 = arith.constant 0 : i32
    return %c0_i32, %c0_i32_0 : i32, i32
  }
  func.func @transform_3(%arg0: i32) -> (i32, i32) {
    %c0_i32 = arith.constant 0 : i32
    %c0_i32_0 = arith.constant 0 : i32
    %c0_i32_1 = arith.constant 0 : i32
    return %c0_i32, %c0_i32_0 : i32, i32
  }
  func.func @transform_4(%arg0: i32) -> (i32, i32) {
    %c0_i32 = arith.constant 0 : i32
    %c0_i32_0 = arith.constant 0 : i32
    %c0_i32_1 = arith.constant 0 : i32
    return %c0_i32, %c0_i32_0 : i32, i32
  }
  func.func @transform_5(%arg0: i32) -> (i32, i32, i32) {
    %c0_i32 = arith.constant 0 : i32
    %c0_i32_0 = arith.constant 0 : i32
    %c0_i32_1 = arith.constant 0 : i32
    return %arg0, %c0_i32, %c0_i32_0 : i32, i32, i32
  }
  func.func @transform_6(%arg0: i32) -> (i32, i32, i32) {
    %c0_i32 = arith.constant 0 : i32
    %c0_i32_0 = arith.constant 0 : i32
    %c0_i32_1 = arith.constant 0 : i32
    return %arg0, %c0_i32, %c0_i32_0 : i32, i32, i32
  }
  func.func @transform_7(%arg0: i32) -> (i32, i32, i32) {
    %c0_i32 = arith.constant 0 : i32
    %c0_i32_0 = arith.constant 0 : i32
    %c0_i32_1 = arith.constant 0 : i32
    return %arg0, %c0_i32, %c0_i32_0 : i32, i32, i32
  }
  func.func @transform_8(%arg0: i32) -> (i32, i32, i32) {
    %c0_i32 = arith.constant 0 : i32
    %c0_i32_0 = arith.constant 0 : i32
    %c0_i32_1 = arith.constant 0 : i32
    return %arg0, %c0_i32, %c0_i32_0 : i32, i32, i32
  }
  func.func @transform_9(%arg0: i32) -> (i32, i32, i32) {
    %c0_i32 = arith.constant 0 : i32
    %c0_i32_0 = arith.constant 0 : i32
    %c0_i32_1 = arith.constant 0 : i32
    return %arg0, %c0_i32, %c0_i32_0 : i32, i32, i32
  }
  func.func @transform_10(%arg0: i32) -> (i32, i32, i32) {
    %c0_i32 = arith.constant 0 : i32
    %c0_i32_0 = arith.constant 0 : i32
    %c0_i32_1 = arith.constant 0 : i32
    return %arg0, %c0_i32, %c0_i32_0 : i32, i32, i32
  }
  func.func @transform_11(%arg0: i32) -> (i32, i32, i32) {
    %c0_i32 = arith.constant 0 : i32
    %c0_i32_0 = arith.constant 0 : i32
    %c0_i32_1 = arith.constant 0 : i32
    return %arg0, %c0_i32, %c0_i32_0 : i32, i32, i32
  }
  func.func @transform_12(%arg0: i32) -> (i32, i32) {
    %c0_i32 = arith.constant 0 : i32
    %c0_i32_0 = arith.constant 0 : i32
    %c0_i32_1 = arith.constant 0 : i32
    return %c0_i32, %c0_i32_0 : i32, i32
  }
}

</mosaic_0001>

<bundles_post_ra>
// kernel: tpu_custom_call.1
= control target key start
LH: loop header
LB: loop body
LE: loop exit
PB: predicated region body
PF: predicated region fallthrough
CT: control target
= control target key end

     0   :  { %17 = vsyncpa [#allocation5], 0  ;;  %s2136_s21 = smov 0   ;;  %s2378_s0 = inlined_call_operand.vmem [shape: f32[8,32], index: 0, kind: input, shape index: {}]   ;;  %s2379_s1 = inlined_call_operand.vmem [shape: f32[8,32], index: 1, kind: input, shape index: {}]   ;;  %s2380_s2 = inlined_call_operand.vmem [shape: f32[8,32], index: 2, kind: input, shape index: {}]   ;;  %s2381_s3 = inlined_call_operand.vmem [shape: f32[1,32], index: 3, kind: input, shape index: {}]   ;;  %s2382_s4 = inlined_call_operand.vmem [shape: f32[1,32], index: 4, kind: input, shape index: {}]   ;;  %s2383_s5 = inlined_call_operand.vmem [shape: f32[2,1,32], index: 5, kind: input, shape index: {}]   ;;  %s2384_s6 = inlined_call_operand.vmem [shape: f32[2,1,32], index: 6, kind: input, shape index: {}]   ;;  %s2385_s7 = inlined_call_operand.vmem [shape: f32[2,32,288], index: 7, kind: input, shape index: {}]   ;;  %s2386_s8 = inlined_call_operand.vmem [shape: f32[2,1,128], index: 8, kind: input, shape index: {}]   ;;  %s2387_s9 = inlined_call_operand.vmem [shape: f32[2,32,32], index: 9, kind: input, shape index: {}]   ;;  %s2388_s10 = inlined_call_operand.vmem [shape: f32[2,128,32], index: 10, kind: input, shape index: {}]   ;;  %s2389_s11 = inlined_call_operand.vmem [shape: f32[2,1,32], index: 11, kind: input, shape index: {}]   ;;  %s2390_s12 = inlined_call_operand.hbm [shape: f32[8,32], index: 12, kind: output, shape index: {}]  }
   0x1 LB: > { %2392 = sst [smem:[#allocation7_spill]] %s2050_s21  ;;  %s2142_s22 = sadd.s32 4294967295, %s2050_s21   ;;  %s2050_s21 = sphi %s2136_s21, %s23_s21  }
   0x2   : > { %p1739_p0 = scmp.ge.s32.totalorder %s2050_s21, 1  ;;  %p410_p1 = scmp.lt.s32.totalorder %s2050_s21, 3 }
   0x4   : > { %p411_p2 = pnand %p1739_p0, %p410_p1 }
   0x5   : > { %p469_p3 = scmp.lt.s32.totalorder (!%p411_p2), %s2142_s22, 1  ;;  %p1745_p4 = scmp.ne.s32.totalorder (!%p411_p2), %s2142_s22, 0 }
   0x6   : > { %414 = sbr.rel (%p411_p2) target bundleno = 2223 (0x8af), region = 68 }
   0xd   : > { %s2148_s23 = scalar_select %p469_p3, %s2142_s22, 1 }
   0xe   : > { %499 = sbr.rel (%p1745_p4) target bundleno = 21 (0x15), region = 72  ;;  %v500_v0 = vld [vmem:[%s2378_s0] sm:$0xff] (!%p1745_p4)  ;;  %vm501_vm0 = vcmask (!%p1745_p4), 261120  }
   0xf   : > { %s1958_s30 = smul.u32 96, %s2148_s23  ;;  %s482_s15 = scalar_lea.vmem %s2386_s8, %s2148_s23  ;;  %502 = vst.msk [vmem:[#allocation2] sm:$0xff] (!%p1745_p4), %vm501_vm0, %v500_v0 }
  0x10   : > { %s1772_s16 = sshll.u32 %s2148_s23, 5  ;;  %s1773_s17 = sshll.u32 %s2148_s23, 7 }
  0x11   : > { %s2168_s20 = scalar_lea.vmem %s2385_s7, %s1958_s30  ;;  %s2173_s26 = scalar_lea.vmem %s2387_s9, %s1772_s16 }
  0x12   : > { %s2178_s28 = scalar_lea.vmem %s2388_s10, %s1773_s17  ;;  %s495_s14 = scalar_lea.vmem %s2389_s11, %s2148_s23 }
  0x15 PF: > { %vm504_vm1 = vcmask 261120   ;;  %v536_v8 = vld [vmem:[%s2168_s20 + $0x8] sm:$0xff]  ;;  %v539_v9 = vld [vmem:[%s2168_s20 + $0x20] sm:$0xff]  ;;  %v538_v12 = vld [vmem:[%s2168_s20 + $0x18] sm:$0xff]  ;;  %v2052_v15 = vmov 0.0   ;;  %v2053_v21 = vmov 0.0|0.0   ;;  %s2393_s13 = scalar_lea.vmem %s2383_s5, %s2148_s23  ;;  %s2394_s21 = scalar_lea.vmem %s2384_s6, %s2148_s23 }
  0x16   : > { %v2188_v1 = vld [vmem:[#allocation2] sm:$0xff]  ;;  %v1914_v11 = vpack.c.bf16 %v539_v9, %v536_v8  ;;  %v542_v13 = vld [vmem:[%s2168_s20 + $0x38] sm:$0xff]  ;;  %v545_v14 = vld [vmem:[%s2168_s20 + $0x50] sm:$0xff]  ;;  %614 = vmatprep.mubr.f32.mxu1 %v2052_v15  ;;  %1838 = vmatprep.subr.mxu0 %v2052_v15  ;;  %vm2054_vm2 = vmmov 0   ;;  %s2055_s16 = smov 96   ;;  %s2056_s24 = smov 32  }
  0x17   : > { %v505_v2 = vsel %vm504_vm1, %v2188_v1, 0.0  ;;  %v535_v10 = vld [vmem:[%s2168_s20] sm:$0xff]  ;;  %v1918_v17 = vpack.c.bf16 %v545_v14, %v542_v13  ;;  %v541_v18 = vld [vmem:[%s2168_s20 + $0x30] sm:$0xff]  ;;  %v544_v19 = vld [vmem:[%s2168_s20 + $0x48] sm:$0xff]  ;;  %1840 = vmatprep.mubr.msk.f32.mxu0 %vm2054_vm2, %v2052_v15  ;;  %s2058_s29 = smov 72   ;;  %s2059_s17 = smov 88  }
  0x18   : > { %506 = vadd.xlane.f32.xlu0 %v505_v2  ;;  %v1916_v16 = vpack.c.bf16 %v538_v12, %v535_v10  ;;  %1915 = vmatprep.subr.bf16.mxu1 %v1914_v11  ;;  %v1920_v20 = vpack.c.bf16 %v544_v19, %v541_v18  ;;  %v700_v22 = vld [vmem:[%s2380_s2] sm:$0xff]  ;;  %v537_v30 = vld [vmem:[%s2168_s20 + $0x10] sm:$0xff]  ;;  %v540_v31 = vld [vmem:[%s2168_s20 + $0x28] sm:$0xff]  ;;  %s2060_s19 = smov 80   ;;  %s2062_s25 = smov 104   ;;  %vm732_vm3 = vcmask 64512  }
  0x19   : > { %703 = vrot.lane.b32.xlu1 %v700_v22, %s2055_s16  ;;  %v699_v23 = vld [vmem:[%s2379_s1] sm:$0xff]  ;;  %v1923_v34 = vpack.c.bf16 %v540_v31, %v537_v30  ;;  %v546_v37 = vld [vmem:[%s2168_s20 + $0x58] sm:$0xff]  ;;  %v1429_v62 = vld [vmem:[%s2178_s28 + $0x8] sm:$0xff]  ;;  %s2066_s18 = smov 56   ;;  %s2067_s30 = smov 8   ;;  %vm1068_vm5 = vcmask 130112  }
  0x1a   : > { %1917 = vmatpush1.bf16.msra.mxu1 %v1916_v16  ;;  %v1746_v28 = vld [vmem:[%s2393_s13] ss:$0 sm:$0xff]  ;;  %v1433_v10 = vld [vmem:[%s2178_s28 + $0x28] sm:$0xff]  ;;  %v1434_v13 = vld [vmem:[%s2178_s28 + $0x30] sm:$0xff]  ;;  %vm1240_vm6 = vcmask 195712   ;;  %vm1412_vm7 = vcmask 261312  }
  0x1b   : > { %1919 = vmatprep.subr.bf16.mxu1 %v1918_v17  ;;  %v1747_v32 = vld [vmem:[%s2394_s21] ss:$0 sm:$0xff]  ;;  %v1435_v14 = vld [vmem:[%s2178_s28 + $0x38] sm:$0xff]  ;;  %v1437_v19 = vld [vmem:[%s2178_s28 + $0x48] sm:$0xff]  ;;  %s2068_s21 = smov 16   ;;  %p1765_p5 = scmp.ne.s32.totalorder %s2142_s22, 1 }
  0x1c   : > { %v543_v36 = vld [vmem:[%s2168_s20 + $0x40] sm:$0xff]  ;;  %s2057_s20 = smov 120   ;;  %v1938_v16 = vpack.c.bf16 %v1435_v14, %v1434_v13 }
  0x1d   : > { %713 = vrot.lane.b32.xlu1 %v699_v23, %s2056_s24  ;;  %v1926_v38 = vpack.c.bf16 %v546_v37, %v543_v36  ;;  %v1750_v56 = vld [vmem:[%s482_s15] ss:$0 sm:$0xff]  ;;  %s2063_s15 = smov 64  }
  0x1e   : > { %1921 = vmatpush1.bf16.msra.mxu1 %v1920_v20  ;;  %v1428_v61 = vld [vmem:[%s2178_s28] sm:$0xff] }
  0x1f   : > { %1922 = vmatprep.subr.bf16.mxu1 %v2053_v21  ;;  %v1432_v9 = vld [vmem:[%s2178_s28 + $0x20] sm:$0xff] }
  0x20   : > { %v1935_v12 = vpack.c.bf16 %v1433_v10, %v1432_v9  ;;  %v1436_v18 = vld [vmem:[%s2178_s28 + $0x40] sm:$0xff] }
  0x21   : > { %v1941_v20 = vpack.c.bf16 %v1437_v19, %v1436_v18 }
  0x8b   : > { %v704_v40 = vpop.permute.xlu1 %703 }
  0x8f   : > { %v714_v46 = vpop.permute.xlu1 %713 }
  0xa5   : > { %v507_v3 = vpop.xlane.xlu0 %506 }
  0xa6   : > { %v509_v4 = vmul.f32 0.03125, %v507_v3  ;;  %v1929_v3 = vpack.c.bf16 %v1429_v62, %v1428_v61 }
  0xa8   : > { %v510_v5 = vsub.f32 %v2188_v1, %v509_v4  ;;  %v1430_v4 = vld [vmem:[%s2178_s28 + $0x10] sm:$0xff] }
  0xaa   : > { %v511_v6 = vmul.f32 %v510_v5, %v510_v5 }
  0xac   : > { %v512_v7 = vsel %vm504_vm1, %v511_v6, 0.0 }
  0xad   : > { %513 = vadd.xlane.f32.xlu0 %v512_v7 }
 0x13a   : > { %v514_v24 = vpop.xlane.xlu0 %513 }
 0x13b   : > { %v515_v25 = vmul.f32 0.03125, %v514_v24 }
 0x13d   : > { %v516_v26 = vadd.f32 1e-05, %v515_v25  ;;  %v1440_v25 = vld [vmem:[%s2178_s28 + $0x60] sm:$0xff] }
 0x13f   : > { %1992 = vrsqrt.f32 %v516_v26  ;;  %v1441_v26 = vld [vmem:[%s2178_s28 + $0x68] sm:$0xff] }
 0x149   : > { %v1993_v27 = vpop.eup %1992 }
 0x14a   : > { %v518_v29 = vmul.f32 %v1993_v27, %v510_v5  ;;  %v1431_v5 = vld [vmem:[%s2178_s28 + $0x18] sm:$0xff]  ;;  %v1947_v27 = vpack.c.bf16 %v1441_v26, %v1440_v25 }
 0x14b   : > { %v1932_v8 = vpack.c.bf16 %v1431_v5, %v1430_v4 }
 0x14c   : > { %v526_v33 = vmul.f32 %v1746_v28, %v518_v29  ;;  %v1442_v28 = vld [vmem:[%s2178_s28 + $0x70] sm:$0xff]  ;;  %v1443_v29 = vld [vmem:[%s2178_s28 + $0x78] sm:$0xff] }
 0x14d   : > { %v1950_v31 = vpack.c.bf16 %v1443_v29, %v1442_v28 }
 0x14e   : > { %v534_v35 = vadd.f32 %v1747_v32, %v526_v33 }
 0x150   : > { %1748 = vmatmul.mubr.msk.f32.vlgmr.msra.gmra.mrb[0].mxu1 %vm504_vm1, %v534_v35 }
 0x151   : > { %1924 = vmatpush3.bf16.msra.mxu1 %v1923_v34  ;;  %1825 = vmatprep.mubr.msk.f32.mxu1 %vm2054_vm2, %v2052_v15 }
 0x152   : > { %1925 = vmatprep.subr.bf16.mxu1 %v2053_v21 }
 0x155   : > { %1927 = vmatpush3.bf16.msra.mxu1 %v1926_v38 }
 0x156   : > { %1828 = vmatprep.subr.mxu1 %v2052_v15 }
 0x158   : > { %1826 = vmatmul.mubr.msk.f32.vlgmr.msra.gmra.mrb[2].mxu1 %vm504_vm1, %v534_v35  ;;  %v723_v35 = vlaneseq }
 0x159   : > { %1830 = vmatprep.mubr.msk.f32.mxu1 %vm2054_vm2, %v2052_v15 }
 0x15a   : > { %v724_v36 = vshrl.u32 %v723_v35, 7  ;;  %v726_v37 = vand.u32 127, %v723_v35 }
 0x15c   : > { %vm727_vm4 = vcmp.le.s32.totalorder %v726_v37, %v724_v36  ;;  %v1417_v36 = vld [vmem:[%s2173_s26 + $0x10] sm:$0xff]  ;;  %v1418_v37 = vld [vmem:[%s2173_s26 + $0x18] sm:$0xff] }
 0x223   : > { %v616_v39 = vpop.f32.mrb[0].mxu1 }
 0x224   : > { %v2237_v41 = vpop.f32.mrb[1].mxu1  ;;  %v698_v58 = vadd.f32 %v1750_v56, %v616_v39 }
 0x225   : > { %v706_v42 = vmul.f32 %v704_v40, %v2237_v41  ;;  %v701_v47 = vmul.f32 %v699_v23, %v2237_v41  ;;  %v716_v51 = vmul.f32 %v714_v46, %v2237_v41  ;;  %v1439_v23 = vld [vmem:[%s2178_s28 + $0x58] sm:$0xff] }
 0x226   : > { %v1420_v60 = vmul.f32 0.044715, %v698_v58  ;;  %v1419_v33 = vmul.f32 0.5, %v698_v58 }
 0x227   : > { %708 = vrot.lane.b32.xlu1 %v706_v42, %s2056_s24 }
 0x228   : > { %v1421_v2 = vmul.f32 %v1420_v60, %v698_v58 }
 0x22a   : > { %v1422_v7 = vmul.f32 %v1421_v2, %v698_v58 }
 0x22b   : > { %v687_v43 = vpop.f32.mrb[2].mxu1 }
 0x22c   : > { %v717_v44 = vmul.f32 %v700_v22, %v687_v43  ;;  %v1827_v45 = vpop.f32.mrb[3].mxu1  ;;  %v1423_v11 = vadd.f32 %v1422_v7, %v698_v58  ;;  %v1438_v22 = vld [vmem:[%s2178_s28 + $0x50] sm:$0xff]  ;;  %s2064_s28 = smov 48  }
 0x22d   : > { %v1944_v24 = vpack.c.bf16 %v1439_v23, %v1438_v22 }
 0x22e   : > { %719 = vrot.lane.b32.xlu0 %v717_v44, %s2056_s24  ;;  %s2061_s24 = smov 112   ;;  %v1424_v17 = vmul.f32 0.7978846, %v1423_v11 }
 0x230   : > { %1994 = vtanh.f32 %v1424_v17 }
 0x23a   : > { %v1995_v30 = vpop.eup %1994 }
 0x23b   : > { %v1426_v32 = vadd.f32 1.0, %v1995_v30 }
 0x23d   : > { %v1427_v34 = vmul.f32 %v1426_v32, %v1419_v33  ;;  %v1415_v32 = vld [vmem:[%s2173_s26] sm:$0xff]  ;;  %v1416_v33 = vld [vmem:[%s2173_s26 + $0x8] sm:$0xff] }
 0x23e   : > { %v1953_v35 = vpack.c.bf16 %v1416_v33, %v1415_v32 }
 0x299   : > { %v709_v48 = vpop.permute.xlu1 %708 }
 0x29a   : > { %v711_v49 = vadd.f32 %v709_v48, %v701_v47 }
 0x29c   : > { %v728_v50 = vmul.f32 0.35355338, %v711_v49 }
 0x29e   : > { %898 = vrot.lane.b32.xlu1 %v728_v50, %s2057_s20  ;;  %s2069_s20 = smov 24  }
 0x2a0   : > { %v720_v52 = vpop.permute.xlu0 %719 }
 0x2a1   : > { %v722_v53 = vadd.f32 %v720_v52, %v716_v51 }
 0x2a3   : > { %1244 = vrot.lane.b32.xlu0 %v722_v53, %s2058_s29  ;;  %730 = vrot.lane.b32.xlu1 %v722_v53, %s2055_s16  ;;  %s2065_s16 = smov 40  }
 0x2a7   : > { %900 = vrot.lane.b32.xlu1 %v722_v53, %s2059_s17 }
 0x2ab   : > { %1072 = vrot.lane.b32.xlu1 %v722_v53, %s2060_s19 }
 0x2af   : > { %1070 = vrot.lane.b32.xlu1 %v728_v50, %s2061_s24 }
 0x2b3   : > { %1242 = vrot.lane.b32.xlu1 %v728_v50, %s2062_s25 }
 0x310   : > { %v899_v54 = vpop.permute.xlu1 %898 }
 0x315   : > { %v731_v55 = vpop.permute.xlu1 %730  ;;  %v1245_v0 = vpop.permute.xlu0 %1244 }
 0x316   : > { %1829 = vmatpush3.xpose.msk.msra.mxu1 %vm732_vm3, %v731_v55 }
 0x317   : > { %1833 = vmatprep.subr.mxu1 %v2052_v15 }
 0x319   : > { %1831 = vmatmul.mubr.msk.f32.vlgmr.msra.gmra.mrb[4].mxu1 %vm732_vm3, %v728_v50  ;;  %v901_v57 = vpop.permute.xlu1 %900 }
 0x31a   : > { %1839 = vmatpush3.xpose.msk.msra.mxu0 %vm732_vm3, %v901_v57  ;;  %1835 = vmatprep.mubr.msk.f32.mxu1 %vm2054_vm2, %v2052_v15 }
 0x31b   : > { %1848 = vmatprep.subr.mxu0 %v2052_v15 }
 0x31d   : > { %1841 = vmatmul.mubr.msk.f32.vlgmr.msra.gmra.mrb[0].mxu0 %vm732_vm3, %v899_v54  ;;  %v1073_v59 = vpop.permute.xlu1 %1072 }
 0x31e   : > { %1849 = vmatpush3.xpose.msk.msra.mxu0 %vm732_vm3, %v1073_v59  ;;  %1850 = vmatprep.mubr.msk.f32.mxu0 %vm2054_vm2, %v2052_v15 }
 0x31f   : > { %1858 = vmatprep.subr.mxu0 %v2052_v15 }
 0x321   : > { %v1071_v63 = vpop.permute.xlu1 %1070 }
 0x322   : > { %1851 = vmatmul.mubr.msk.f32.vlgmr.msra.gmra.mrb[2].mxu0 %vm732_vm3, %v1071_v63 }
 0x323   : > { %1859 = vmatpush3.xpose.msk.msra.mxu0 %vm732_vm3, %v1245_v0  ;;  %1860 = vmatprep.mubr.msk.f32.mxu0 %vm2054_vm2, %v2052_v15 }
 0x324   : > { %1928 = vmatprep.subr.bf16.mxu0 %v2053_v21 }
 0x325   : > { %v1243_v6 = vpop.permute.xlu1 %1242 }
 0x326   : > { %1861 = vmatmul.mubr.msk.f32.vlgmr.msra.gmra.mrb[4].mxu0 %vm732_vm3, %v1243_v6 }
 0x327   : > { %1930 = vmatpush3.bf16.msra.mxu0 %v1929_v3  ;;  %1900 = vmatprep.mubr.msk.f32.mxu0 %vm2054_vm2, %v2052_v15 }
 0x328   : > { %1931 = vmatprep.subr.bf16.mxu0 %v2053_v21 }
 0x32b   : > { %1933 = vmatpush3.bf16.msra.mxu0 %v1932_v8 }
 0x32c   : > { %1934 = vmatprep.subr.bf16.mxu0 %v2053_v21 }
 0x32f   : > { %1936 = vmatpush3.bf16.msra.mxu0 %v1935_v12 }
 0x330   : > { %1937 = vmatprep.subr.bf16.mxu0 %v2053_v21 }
 0x333   : > { %1939 = vmatpush3.bf16.msra.mxu0 %v1938_v16 }
 0x334   : > { %1940 = vmatprep.subr.bf16.mxu0 %v2053_v21 }
 0x337   : > { %1942 = vmatpush3.bf16.msra.mxu0 %v1941_v20 }
 0x338   : > { %1943 = vmatprep.subr.bf16.mxu0 %v2053_v21 }
 0x33b   : > { %1945 = vmatpush3.bf16.msra.mxu0 %v1944_v24 }
 0x33c   : > { %1946 = vmatprep.subr.bf16.mxu0 %v2053_v21 }
 0x33f   : > { %1948 = vmatpush3.bf16.msra.mxu0 %v1947_v27 }
 0x340   : > { %1949 = vmatprep.subr.bf16.mxu0 %v2053_v21 }
 0x343   : > { %1951 = vmatpush3.bf16.msra.mxu0 %v1950_v31 }
 0x346   : > { %1901 = vmatmul.mubr.f32.vlgmr.msra.gmra.mrb[6].mxu0 %v1427_v34 }
 0x3ec   : > { %v804_v38 = vpop.f32.mrb[4].mxu1 }
 0x3ed   : > { %v808_v39 = vsel %vm727_vm4, %v804_v38, -1e+30  ;;  %v1832_v40 = vpop.f32.mrb[5].mxu1  ;;  %v1956_v38 = vpack.c.bf16 %v1418_v37, %v1417_v36 }
 0x3ee   : > { %v809_v42 = vsel %vm732_vm3, %v808_v39, -inf }
 0x3ef   : > { %810 = vmax.xlane.f32.xlu0 %v809_v42 }
 0x3f0   : > { %v972_v43 = vpop.f32.mrb[0].mxu0 }
 0x3f1   : > { %v976_v44 = vsel %vm727_vm4, %v972_v43, -1e+30  ;;  %v1842_v45 = vpop.f32.mrb[1].mxu0 }
 0x3f2   : > { %v977_v46 = vsel %vm732_vm3, %v976_v44, -inf }
 0x3f3   : > { %978 = vmax.xlane.f32.xlu1 %v977_v46 }
 0x3f5   : > { %v1144_v47 = vpop.f32.mrb[2].mxu0 }
 0x3f6   : > { %v1148_v48 = vsel %vm727_vm4, %v1144_v47, -1e+30  ;;  %v1852_v49 = vpop.f32.mrb[3].mxu0 }
 0x3f7   : > { %v1149_v50 = vsel %vm732_vm3, %v1148_v48, -inf }
 0x3f8   : > { %1150 = vmax.xlane.f32.xlu0 %v1149_v50 }
 0x3f9   : > { %v1316_v51 = vpop.f32.mrb[4].mxu0 }
 0x3fa   : > { %v1320_v52 = vsel %vm727_vm4, %v1316_v51, -1e+30  ;;  %v1862_v53 = vpop.f32.mrb[5].mxu0 }
 0x3fb   : > { %v1321_v54 = vsel %vm732_vm3, %v1320_v52, -inf }
 0x3fc   : > { %1322 = vmax.xlane.f32.xlu0 %v1321_v54 }
 0x404   : > { %821 = vrot.lane.b32.xlu1 %v2237_v41, %s2063_s15 }
 0x419   : > { %v2302_v55 = vpop.f32.mrb[6].mxu0 }
 0x41a   : > { %v1902_v56 = vpop.f32.mrb[7].mxu0 }
 0x47c   : > { %v811_v57 = vpop.xlane.xlu0 %810 }
 0x47d   : > { %v812_v58 = vsub.f32 %v808_v39, %v811_v57 }
 0x47f   : > { %v813_v59 = vmul.f32 1.442695, %v812_v58 }
 0x480   : > { %v979_v60 = vpop.xlane.xlu1 %978 }
 0x481   : > { %1996 = vpow2.f32 %v813_v59  ;;  %v980_v61 = vsub.f32 %v976_v44, %v979_v60 }
 0x483   : > { %v981_v62 = vmul.f32 1.442695, %v980_v61 }
 0x484   : > { %v822_v63 = vpop.permute.xlu1 %821 }
 0x485   : > { %1998 = vpow2.f32 %v981_v62  ;;  %1834 = vmatpush3.msra.mxu1 %v822_v63  ;;  %v1151_v0 = vpop.xlane.xlu0 %1150  ;;  %v1766_v63 = vld [vmem:[%s2381_s3] ss:$0 sm:$0xff] (!%p1765_p5) }
 0x486   : > { %v1152_v2 = vsub.f32 %v1148_v48, %v1151_v0  ;;  %1843 = vmatprep.subr.mxu1 %v2052_v15  ;;  %v1763_v48 = vld [vmem:[%s495_s14] ss:$0 sm:$0xff] }
 0x487   : > { %v1518_v49 = vadd.f32 %v1763_v48, %v2302_v55 }
 0x488   : > { %v1153_v3 = vmul.f32 1.442695, %v1152_v2  ;;  %v1767_v2 = vld [vmem:[%s2382_s4] ss:$0 sm:$0xff] (!%p1765_p5) }
 0x489   : > { %v1323_v4 = vpop.xlane.xlu0 %1322 }
 0x48a   : > { %2000 = vpow2.f32 %v1153_v3  ;;  %v1324_v5 = vsub.f32 %v1320_v52, %v1323_v4 }
 0x48b   : > { %v1997_v6 = vpop.eup %1996 }
 0x48c   : > { %v1325_v7 = vmul.f32 1.442695, %v1324_v5  ;;  %v815_v8 = vsel %vm732_vm3, %v1997_v6, 0.0 }
 0x48d   : > { %816 = vadd.xlane.f32.xlu1 %v815_v8 }
 0x48e   : > { %2002 = vpow2.f32 %v1325_v7 }
 0x48f   : > { %v1999_v9 = vpop.eup %1998 }
 0x490   : > { %v983_v10 = vsel %vm732_vm3, %v1999_v9, 0.0 }
 0x491   : > { %984 = vadd.xlane.f32.xlu0 %v983_v10 }
 0x494   : > { %v2001_v11 = vpop.eup %2000 }
 0x495   : > { %v1155_v12 = vsel %vm732_vm3, %v2001_v11, 0.0 }
 0x496   : > { %1156 = vadd.xlane.f32.xlu1 %v1155_v12 }
 0x498   : > { %v2003_v13 = vpop.eup %2002 }
 0x499   : > { %v1327_v14 = vsel %vm732_vm3, %v2003_v13, 0.0 }
 0x49a   : > { %1328 = vadd.xlane.f32.xlu0 %v1327_v14 }
 0x4a7   : > { %1160 = vrot.lane.b32.xlu1 %v2237_v41, %s2064_s28 }
 0x4ab   : > { %1332 = vrot.lane.b32.xlu1 %v2237_v41, %s2065_s16 }
 0x4b0   : > { %988 = vrot.lane.b32.xlu0 %v2237_v41, %s2066_s18 }
 0x51a   : > { %v817_v16 = vpop.xlane.xlu1 %816 }
 0x51b   : > { %2004 = vrcp.f32 %v817_v16 }
 0x51e   : > { %v985_v17 = vpop.xlane.xlu0 %984 }
 0x51f   : > { %2006 = vrcp.f32 %v985_v17 }
 0x523   : > { %v1157_v18 = vpop.xlane.xlu1 %1156 }
 0x524   : > { %2008 = vrcp.f32 %v1157_v18 }
 0x525   : > { %v2005_v19 = vpop.eup %2004 }
 0x526   : > { %v819_v20 = vmul.f32 %v2005_v19, %v1997_v6 }
 0x527   : > { %v1329_v22 = vpop.xlane.xlu0 %1328  ;;  %v1161_v25 = vpop.permute.xlu1 %1160 }
 0x528   : > { %2010 = vrcp.f32 %v1329_v22  ;;  %1836 = vmatmul.mubr.msk.f32.vlgmr.msra.gmra.mrb[6].mxu1 %vm732_vm3, %v819_v20 }
 0x529   : > { %v2007_v23 = vpop.eup %2006  ;;  %1845 = vmatprep.mubr.msk.f32.mxu1 %vm2054_vm2, %v2052_v15 }
 0x52a   : > { %v987_v24 = vmul.f32 %v2007_v23, %v1999_v9 }
 0x52b   : > { %v989_v26 = vpop.permute.xlu0 %988  ;;  %v1333_v28 = vpop.permute.xlu1 %1332 }
 0x52c   : > { %1844 = vmatpush3.msra.mxu1 %v989_v26 }
 0x52d   : > { %1846 = vmatmul.mubr.msk.f32.vlgmr.msra.gmra.mrb[8].mxu1 %vm732_vm3, %v987_v24  ;;  %1853 = vmatprep.subr.mxu1 %v2052_v15 }
 0x52e   : > { %v2009_v41 = vpop.eup %2008  ;;  %1854 = vmatpush3.msra.mxu1 %v1161_v25  ;;  %1855 = vmatprep.mubr.msk.f32.mxu1 %vm2054_vm2, %v2052_v15 }
 0x52f   : > { %v1159_v27 = vmul.f32 %v2009_v41, %v2001_v11  ;;  %1863 = vmatprep.subr.mxu1 %v2052_v15 }
 0x531   : > { %1856 = vmatmul.mubr.msk.f32.vlgmr.msra.gmra.mrb[10].mxu1 %vm732_vm3, %v1159_v27 }
 0x532   : > { %v2011_v29 = vpop.eup %2010  ;;  %1864 = vmatpush3.msra.mxu1 %v1333_v28  ;;  %1865 = vmatprep.mubr.msk.f32.mxu1 %vm2054_vm2, %v2052_v15 }
 0x533   : > { %v1331_v30 = vmul.f32 %v2011_v29, %v2003_v13  ;;  %1952 = vmatprep.subr.bf16.mxu1 %v2053_v21 }
 0x535   : > { %1866 = vmatmul.mubr.msk.f32.vlgmr.msra.gmra.mrb[12].mxu1 %vm732_vm3, %v1331_v30 }
 0x536   : > { %1911 = vmatprep.mubr.msk.f32.mxu1 %vm2054_vm2, %v2052_v15  ;;  %1954 = vmatpush3.bf16.msra.mxu1 %v1953_v35 }
 0x537   : > { %1955 = vmatprep.subr.bf16.mxu1 %v2053_v21 }
 0x53a   : > { %1957 = vmatpush3.bf16.msra.mxu1 %v1956_v38 }
 0x5fb   : > { %v893_v31 = vpop.f32.mrb[6].mxu1 }
 0x5fc   : > { %897 = vst.msk [vmem:[#allocation3] sm:$0xff] %vm732_vm3, %v893_v31  ;;  %v1837_v34 = vpop.f32.mrb[7].mxu1 }
 0x600   : > { %v1060_v39 = vpop.f32.mrb[8].mxu1 }
 0x601   : > { %1065 = vrot.lane.b32.xlu0 %v1060_v39, %s2067_s30  ;;  %v1847_v40 = vpop.f32.mrb[9].mxu1 }
 0x604   : > { %v1232_v42 = vpop.f32.mrb[10].mxu1 }
 0x605   : > { %1237 = vrot.lane.b32.xlu1 %v1232_v42, %s2068_s21  ;;  %v1857_v15 = vpop.f32.mrb[11].mxu1 }
 0x608   : > { %v1404_v43 = vpop.f32.mrb[12].mxu1 }
 0x609   : > { %1409 = vrot.lane.b32.xlu0 %v1404_v43, %s2069_s20  ;;  %v1867_v44 = vpop.f32.mrb[13].mxu1 }
 0x673   : > { %v1066_v45 = vpop.permute.xlu0 %1065 }
 0x674   : > { %1069 = vst.msk [vmem:[#allocation3] sm:$0xff] %vm1068_vm5, %v1066_v45 }
 0x677   : > { %v1238_v46 = vpop.permute.xlu1 %1237 }
 0x678   : > { %1241 = vst.msk [vmem:[#allocation3] sm:$0xff] %vm1240_vm6, %v1238_v46 }
 0x67b   : > { %v1410_v21 = vpop.permute.xlu0 %1409 }
 0x67c   : > { %1413 = vst.msk [vmem:[#allocation3] sm:$0xff] %vm1412_vm7, %v1410_v21 }
 0x683   : > { %v1414_v47 = vld [vmem:[#allocation3] sm:$0xff] }
 0x684   : > { %1912 = vmatmul.mubr.msk.f32.vlgmr.msra.gmra.mrb[14].mxu1 %vm504_vm1, %v1414_v47 }
 0x756   : > { %1599 = sbr.rel (%p1765_p5) target bundleno = 2198 (0x896), region = 76 }
 0x757   : > { %v1590_v50 = vpop.f32.mrb[14].mxu1 }
 0x758   : > { %v1591_v51 = vadd.f32 %v1590_v50, %v1518_v49  ;;  %v1913_v52 = vpop.f32.mrb[15].mxu1 }
 0x75a   : > { %v1594_v53 = vadd.f32 %v1591_v51, %v2188_v1 }
 0x75c   : > { %1595 = vst.msk [vmem:[#allocation2] sm:$0xff] %vm504_vm1, %v1594_v53  ;;  %v1600_v54 = vsel (!%p1765_p5), %vm504_vm1, %v1594_v53, 0.0 }
 0x75d   : > { %1601 = vadd.xlane.f32.xlu0 %v1600_v54 }
 0x7ea   : > { %v1602_v56 = vpop.xlane.xlu0 %1601 }
 0x7eb   : > { %v1603_v57 = vmul.f32 0.03125, %v1602_v56 }
 0x7ed   : > { %v1604_v58 = vsub.f32 %v1594_v53, %v1603_v57 }
 0x7ef   : > { %v1605_v59 = vmul.f32 %v1604_v58, %v1604_v58 }
 0x7f1   : > { %v1606_v60 = vsel %vm504_vm1, %v1605_v59, 0.0 }
 0x7f2   : > { %1607 = vadd.xlane.f32.xlu0 %v1606_v60 }
 0x87f   : > { %v1608_v55 = vpop.xlane.xlu0 %1607 }
 0x880   : > { %v1609_v61 = vmul.f32 0.03125, %v1608_v55 }
 0x882   : > { %v1610_v62 = vadd.f32 1e-05, %v1609_v61 }
 0x884   : > { %2012 = vrsqrt.f32 %v1610_v62 }
 0x88e   : > { %v2013_v1 = vpop.eup %2012 }
 0x88f   : > { %v1612_v0 = vmul.f32 %v2013_v1, %v1604_v58 }
 0x891   : > { %v1620_v3 = vmul.f32 %v1766_v63, %v1612_v0 }
 0x893   : > { %v1628_v4 = vadd.f32 %v1767_v2, %v1620_v3 }
 0x895   : > { %1629 = vst.msk [vmem:[#allocation4] sm:$0xff] %vm504_vm1, %v1628_v4 }
 0x896 PF: > { %p1963_p6 = scmp.eq.s32.totalorder %s2142_s22, 1  ;;  %s2070_s24 = smov [#allocation4]  }
 0x897   : > { %s1637_s25 = sshll.u32 %s2070_s24, 4  ;;  %s1638_s25 = int_to_ptr.vmem [resolvable:$true] %s1637_s25 }
 0x898   : > { %s2014_s27 = scalar_lea.vmem %s1638_s25, 128  ;;  %p2021_p10 = scmp.lt.s32.totalorder %s1638_s25, %s1638_s25 }
 0x899   : > { %p2015_p7 = scmp.ne.s32.totalorder %s1638_s25, %s2014_s27  ;;  %p2022_p11 = scmp.lt.s32.totalorder %s2014_s27, %s2014_s27 }
 0x89b   : > { %p2016_p8 = pnand %p2015_p7, %p1963_p6  ;;  %p2023_p12 = por %p2022_p11, %p2021_p10 }
 0x89d   : > { %p2017_p9 = pneg %p2016_p8 }
 0x89f   : > { %p2024_p13 = pnand %p2023_p12, %p2017_p9 }
 0x8a1   : > { %2027 = shalt.err (!%p2024_p13)
}
 0x8a2   : > { %s2028_s28 = scalar_lea.hbm %s2390_s12, 128 }
 0x8a3   : > { %p2029_p0 = scmp.ne.s32.totalorder %s2390_s12, %s2028_s28  ;;  %p2034_p3 = scmp.lt.u32.totalorder %s2028_s28, %s2390_s12 }
 0x8a5   : > { %p2030_p1 = pnand %p2029_p0, %p1963_p6 }
 0x8a7   : > { %p2031_p2 = pneg %p2030_p1 }
 0x8a9   : > { %p2036_p4 = pnand %p2034_p3, %p2031_p2 }
 0x8ab   : > { %2039 = shalt.err (!%p2036_p4)
}
 0x8ac   : > { %1960 = dma.vmem_to_hbm [thread:$0]  (%p1963_p6), %s1638_s25, 128, %s2390_s12, [#allocation5]  }
 0x8ad   : > { %2045 = dma.done.wait (%p1963_p6), [#allocation5], 128  }
 0x8ae   : > { %2047 = vsyncadd (%p1963_p6), [#allocation5], 4294967168 }
 0x8af PF: > { %s2395_s29 = sld [smem:[#allocation7_spill]] }
 0x8b5   : > { %s23_s21 = sadd.s32 1, %s2395_s29  }
 0x8b6   : > { %p20_p5 = scmp.ge.s32.totalorder %s23_s21, 4  }
 0x8b8   :  { %22 = sbr.rel (!%p20_p5) target bundleno = 1 (0x1), region = 121 }
 0x8bf   :  { %1650 = vsyncpa [#allocation5], 1 }
 0x8c0   :  { %1652 = vsyncpa [#allocation5 + $0x1], 1 }

</bundles_post_ra>
